<compile_context>
chip_gen: v5e
topology: v5e:2x2
jax: 0.10.0
libtpu: 0.0.40
codegen_flags: <defaults>
</compile_context>

<pallas_src>
import functools

import jax
import jax.numpy as jnp
from jax.experimental import pallas as pl
from jax.experimental.pallas import tpu as pltpu

BN_EPS = 1e-5


def _round_up(x, m):
    return ((x + m - 1) // m) * m


def _vmem_limit(vmem_need):
    """Generation-aware scoped-VMEM limit with ~20% headroom below physical capacity."""
    try:
        phys = pltpu.get_tpu_info().vmem_capacity_bytes
    except Exception:
        phys = 64 << 20                       # conservative fallback (v7x per-TC VMEM)
    cap = int(phys * 0.8)
    return int(min(max(2 * vmem_need, 32 << 20), cap))


# --------------------------------------------------------------------------- #
# Stage 1: per-edge-type linear  msg[e] = hv @ W_e^T + b_e   (computed once)   #
# --------------------------------------------------------------------------- #
def _msg_kernel(h_ref, w_ref, b_ref, o_ref):
    # bf16 x bf16 -> f32 on the MXU, add bias in f32, store bf16.
    o_ref[...] = (jnp.dot(h_ref[...], w_ref[...],
                          preferred_element_type=jnp.float32)
                  + b_ref[...]).astype(o_ref.dtype)


# --------------------------------------------------------------------------- #
# Stage 2: eu_sum = sum_e A_e @ msg_e ; BN + ReLU (+ residual) epilogue        #
# --------------------------------------------------------------------------- #
def _aggregate_kernel(h_ref, a_ref, msg_ref, scale_ref, shift_ref,
                      o_ref, acc_ref, *, last_layer):
    """grid = (dst_row_tiles, num_etypes); edge-type axis (innermost) is the reduction."""
    e = pl.program_id(1)

    @pl.when(e == 0)
    def _():
        acc_ref[...] = jnp.zeros_like(acc_ref)

    # eu_sum[rows of tile i] += A_e[rows, :] @ msg_e      (bf16 x bf16 -> f32 accumulate)
    acc_ref[...] += jnp.dot(a_ref[...], msg_ref[...],
                            preferred_element_type=jnp.float32)

    @pl.when(e == pl.num_programs(1) - 1)
    def _():
        y = acc_ref[...] * scale_ref[...] + shift_ref[...]   # folded eval-mode BatchNorm1d
        y = jnp.maximum(y, 0.0)                              # ReLU; dropout = identity (eval)
        if last_layer:
            y = y + h_ref[...]                               # node_update residual (f32)
        o_ref[...] = y.astype(o_ref.dtype)


def gearnet_layer_forward(hv, W, b, A, gamma, beta, running_mean, running_var,
                          *, last_layer):
    """hv: (N, D); W: (E, D, D) PyTorch Linear weights; b: (E, D);
    A: (E, N, N) dense adjacency with A[e, dst, src] = 1.0 for an edge src->dst."""
    N, D = hv.shape
    E = W.shape[0]

    d_pad = _round_up(D, 128)                    # lane-dense hidden dim
    tm = min(256, _round_up(N, 8))               # dst-row tile (full MXU M-dim on v6e/v7x)
    n_pad = _round_up(N, tm)
    rows = n_pad // tm

    # ---- fold eval-mode BatchNorm1d into scale/shift (padded lanes stay 0)
    scale = (gamma.astype(jnp.float32) *
             jax.lax.rsqrt(running_var.astype(jnp.float32) + BN_EPS))
    shift = beta.astype(jnp.float32) - running_mean.astype(jnp.float32) * scale
    scale_p = jnp.zeros((1, d_pad), jnp.float32).at[0, :D].set(scale)
    shift_p = jnp.zeros((1, d_pad), jnp.float32).at[0, :D].set(shift)

    # ---- node features: f32 copy for the residual, bf16 copy for the MXU linear
    hv_p = jnp.zeros((n_pad, d_pad), jnp.float32).at[:N, :D].set(hv.astype(jnp.float32))
    hv_bf = hv_p.astype(jnp.bfloat16)

    # ---- per-edge-type weights, pre-transposed so msg_e = hv @ w_t[e]
    w_t = jnp.zeros((E, d_pad, d_pad), jnp.float32).at[:, :D, :D].set(
        jnp.transpose(W, (0, 2, 1)).astype(jnp.float32))
    w_bf = w_t.astype(jnp.bfloat16)
    b_p = jnp.zeros((E, 1, d_pad), jnp.float32).at[:, 0, :D].set(b.astype(jnp.float32))

    # ---- adjacency: pad and store as bf16 (0/1 exact) to halve the dominant HBM stream
    a_p = jnp.zeros((E, n_pad, n_pad), jnp.bfloat16).at[:, :N, :N].set(
        A.astype(jnp.bfloat16))

    # ------------------------------------------------------------------ stage 1: messages
    msg_vmem = (2 * tm * d_pad * 2            # hv tile (double-buffered, bf16)
                + 2 * d_pad * d_pad * 2       # W_e^T block
                + 2 * d_pad * 4               # bias
                + 2 * tm * d_pad * 2)         # out tile
    msg_flops = 2 * E * n_pad * d_pad * d_pad
    msg_bytes = (E * n_pad * d_pad * 2        # hv re-streamed per edge type
                 + E * d_pad * d_pad * 2      # weights
                 + E * d_pad * 4              # biases
                 + E * n_pad * d_pad * 2)     # msg out

    msg = pl.pallas_call(
        _msg_kernel,
        out_shape=jax.ShapeDtypeStruct((E, n_pad, d_pad), jnp.bfloat16),
        grid_spec=pltpu.PrefetchScalarGridSpec(
            num_scalar_prefetch=0,
            grid=(E, rows),
            in_specs=[
                pl.BlockSpec((tm, d_pad), lambda e, r: (r, 0)),              # hv tile
                pl.BlockSpec((None, d_pad, d_pad), lambda e, r: (e, 0, 0)),  # W_e^T
                pl.BlockSpec((None, 1, d_pad), lambda e, r: (e, 0, 0)),      # b_e
            ],
            out_specs=pl.BlockSpec((None, tm, d_pad), lambda e, r: (e, r, 0)),
        ),
        compiler_params=pltpu.CompilerParams(
            dimension_semantics=("arbitrary", "parallel"),
            vmem_limit_bytes=_vmem_limit(msg_vmem)),
        cost_estimate=pl.CostEstimate(flops=msg_flops, transcendentals=0,
                                      bytes_accessed=msg_bytes),
    )(hv_bf, w_bf, b_p)

    # ------------------------------------------------------------------ stage 2: aggregate
    agg_vmem = (2 * tm * d_pad * 4            # hv residual tile (double-buffered, f32)
                + 2 * tm * n_pad * 2          # A_e dst-row tile (double-buffered, bf16)
                + 2 * n_pad * d_pad * 2       # msg_e block (double-buffered, bf16)
                + 4 * d_pad * 4               # scale / shift
                + tm * d_pad * 4              # f32 accumulator scratch
                + 2 * tm * d_pad * 4)         # output tile (double-buffered)
    agg_flops = 2 * E * n_pad * n_pad * d_pad
    agg_bytes = (E * n_pad * n_pad * 2        # A stream
                 + rows * E * n_pad * d_pad * 2  # msg re-streamed per dst-row tile
                 + n_pad * d_pad * 4          # hv residual
                 + n_pad * d_pad * 4          # output
                 + 4 * d_pad * 4)             # BN scale/shift

    kernel = functools.partial(_aggregate_kernel, last_layer=last_layer)
    out = pl.pallas_call(
        kernel,
        out_shape=jax.ShapeDtypeStruct((n_pad, d_pad), hv.dtype),
        grid_spec=pltpu.PrefetchScalarGridSpec(
            num_scalar_prefetch=0,
            grid=(rows, E),
            in_specs=[
                pl.BlockSpec((tm, d_pad), lambda i, e: (i, 0)),              # hv residual tile
                pl.BlockSpec((None, tm, n_pad), lambda i, e: (e, i, 0)),     # A_e dst rows
                pl.BlockSpec((None, n_pad, d_pad), lambda i, e: (e, 0, 0)),  # msg_e (streamed)
                pl.BlockSpec((1, d_pad), lambda i, e: (0, 0)),               # bn scale
                pl.BlockSpec((1, d_pad), lambda i, e: (0, 0)),               # bn shift
            ],
            out_specs=pl.BlockSpec((tm, d_pad), lambda i, e: (i, 0)),
            scratch_shapes=[pltpu.VMEM((tm, d_pad), jnp.float32)],           # eu_sum acc
        ),
        compiler_params=pltpu.CompilerParams(
            dimension_semantics=("parallel", "arbitrary"),
            vmem_limit_bytes=_vmem_limit(agg_vmem)),
        cost_estimate=pl.CostEstimate(flops=agg_flops, transcendentals=0,
                                      bytes_accessed=agg_bytes),
    )(hv_p, a_p, msg, scale_p, shift_p)

    return out[:N, :D]


def _reference(hv, W, b, A, gamma, beta, mean, var, *, last_layer):
    eu_sum = jnp.zeros_like(hv, dtype=jnp.float32)
    for e in range(W.shape[0]):
        msg = hv @ W[e].T + b[e]
        eu_sum = eu_sum + A[e] @ msg
    y = (eu_sum - mean) * jax.lax.rsqrt(var + BN_EPS) * gamma + beta
    y = jnp.maximum(y, 0.0)
    if last_layer:
        y = y + hv
    return y


if __name__ == "__main__":
    key = jax.random.PRNGKey(0)
    N, D, E = 16, 32, 3          # nodes, hidden_dim, number of edge types

    k = jax.random.split(key, 8)
    hv = jax.random.normal(k[0], (N, D), dtype=jnp.float32)
    W = jax.random.normal(k[1], (E, D, D), dtype=jnp.float32) * 0.1
    b = jax.random.normal(k[2], (E, D), dtype=jnp.float32) * 0.1
    # dense binary adjacency per edge type (A[e, dst, src])
    A = (jax.random.uniform(k[3], (E, N, N)) < 0.25).astype(jnp.float32)
    gamma = 1.0 + 0.1 * jax.random.normal(k[4], (D,), dtype=jnp.float32)
    beta = 0.1 * jax.random.normal(k[5], (D,), dtype=jnp.float32)
    running_mean = 0.1 * jax.random.normal(k[6], (D,), dtype=jnp.float32)
    running_var = jnp.abs(1.0 + 0.1 * jax.random.normal(k[7], (D,), dtype=jnp.float32))

    for last_layer in (True, False):
        out = gearnet_layer_forward(hv, W, b, A, gamma, beta, running_mean,
                                    running_var, last_layer=last_layer)
        out = jax.block_until_ready(out)
        ref = _reference(hv, W, b, A, gamma, beta, running_mean, running_var,
                         last_layer=last_layer)
        # bf16 operands in both matmuls (f32 accumulation) -> relaxed tolerance vs f32 ref
        assert jnp.allclose(out, ref, atol=2e-2, rtol=2e-2), \
            f"mismatch vs reference (last_layer={last_layer})"

    print("KERNEL_OK")
</pallas_src>

<mosaic_0001>
module attributes {stable_mosaic.version = 11 : i64} {
  func.func @_msg_kernel(%arg0: i32, %arg1: i32, %arg2: memref<16x128xbf16, #tpu.memory_space<vmem>>, %arg3: memref<1x128x128xbf16, #tpu.memory_space<vmem>>, %arg4: memref<1x1x128xf32, #tpu.memory_space<vmem>>, %arg5: memref<1x16x128xbf16, #tpu.memory_space<vmem>>) attributes {dimension_semantics = [#tpu.dimension_semantics<arbitrary>, #tpu.dimension_semantics<parallel>], iteration_bounds = array<i64: 3, 1>, scalar_prefetch = 0 : i64, scratch_operands = 0 : i64, tpu.core_type = #tpu.core_type<tc>, window_params = [{transform_indices = @transform_0, window_bounds = array<i64: 16, 128>}, {transform_indices = @transform_1, window_bounds = array<i64: 1, 128, 128>}, {transform_indices = @transform_2, window_bounds = array<i64: 1, 1, 128>}, {transform_indices = @transform_3, window_bounds = array<i64: 1, 16, 128>}]} {
    %c0 = arith.constant 0 : index
    %c0_0 = arith.constant 0 : index
    %0 = vector.load %arg2[%c0, %c0_0] : memref<16x128xbf16, #tpu.memory_space<vmem>>, vector<16x128xbf16>
    %c0_1 = arith.constant 0 : index
    %c0_2 = arith.constant 0 : index
    %c0_3 = arith.constant 0 : index
    %1 = vector.load %arg3[%c0_1, %c0_2, %c0_3] : memref<1x128x128xbf16, #tpu.memory_space<vmem>>, vector<1x128x128xbf16>
    %2 = vector.shape_cast %1 : vector<1x128x128xbf16> to vector<128x128xbf16>
    %cst = arith.constant dense<0.000000e+00> : vector<16x128xf32>
    %3 = tpu.matmul %0, %2, %cst {dimension_numbers = #tpu.dot_dimension_numbers<[1], [0], [0], [1], [0, 0, 1, 1], [], []>} : vector<16x128xbf16>, vector<128x128xbf16>, vector<16x128xf32> -> vector<16x128xf32>
    %c0_4 = arith.constant 0 : index
    %c0_5 = arith.constant 0 : index
    %c0_6 = arith.constant 0 : index
    %4 = vector.load %arg4[%c0_4, %c0_5, %c0_6] : memref<1x1x128xf32, #tpu.memory_space<vmem>>, vector<1x1x128xf32>
    %5 = vector.shape_cast %4 : vector<1x1x128xf32> to vector<1x128xf32>
    %6 = vector.broadcast %5 : vector<1x128xf32> to vector<16x128xf32>
    %7 = arith.addf %3, %6 : vector<16x128xf32>
    %8 = arith.truncf %7 : vector<16x128xf32> to vector<16x128xbf16>
    %c0_7 = arith.constant 0 : index
    %c0_8 = arith.constant 0 : index
    %c0_9 = arith.constant 0 : index
    %9 = vector.load %arg5[%c0_7, %c0_8, %c0_9] : memref<1x16x128xbf16, #tpu.memory_space<vmem>>, vector<1x16x128xbf16>
    %10 = vector.shape_cast %9 : vector<1x16x128xbf16> to vector<16x128xbf16>
    %11 = vector.shape_cast %8 : vector<16x128xbf16> to vector<1x16x128xbf16>
    tpu.vector_store %arg5[%c0_7, %c0_8, %c0_9], %11 {strides = array<i32>} : memref<1x16x128xbf16, #tpu.memory_space<vmem>>, vector<1x16x128xbf16>,
    return
  }
  func.func @transform_0(%arg0: i32, %arg1: i32) -> (i32, i32) {
    %c0_i32 = arith.constant 0 : i32
    %c0_i32_0 = arith.constant 0 : i32
    return %arg1, %c0_i32 : i32, i32
  }
  func.func @transform_1(%arg0: i32, %arg1: i32) -> (i32, i32, i32) {
    %c0_i32 = arith.constant 0 : i32
    %c0_i32_0 = arith.constant 0 : i32
    %c0_i32_1 = arith.constant 0 : i32
    return %arg0, %c0_i32, %c0_i32_0 : i32, i32, i32
  }
  func.func @transform_2(%arg0: i32, %arg1: i32) -> (i32, i32, i32) {
    %c0_i32 = arith.constant 0 : i32
    %c0_i32_0 = arith.constant 0 : i32
    %c0_i32_1 = arith.constant 0 : i32
    return %arg0, %c0_i32, %c0_i32_0 : i32, i32, i32
  }
  func.func @transform_3(%arg0: i32, %arg1: i32) -> (i32, i32, i32) {
    %c0_i32 = arith.constant 0 : i32
    %c0_i32_0 = arith.constant 0 : i32
    return %arg0, %arg1, %c0_i32 : i32, i32, i32
  }
}

</mosaic_0001>

<bundles_post_ra>
// kernel: tpu_custom_call.1
= control target key start
LH: loop header
LB: loop body
LE: loop exit
PB: predicated region body
PF: predicated region fallthrough
CT: control target
= control target key end

     0   :  { %8 = vsyncpa [#allocation3], 0  ;;  %s1021_s0 = inlined_call_operand.hbm [shape: bf16[16,128], index: 0, kind: input, shape index: {}]   ;;  %s1022_s1 = inlined_call_operand.hbm [shape: bf16[3,128,128], index: 1, kind: input, shape index: {}]   ;;  %s1023_s2 = inlined_call_operand.hbm [shape: f32[3,1,128], index: 2, kind: input, shape index: {}]   ;;  %s1024_s3 = inlined_call_operand.hbm [shape: bf16[3,16,128], index: 3, kind: output, shape index: {}]  }
   0x1   :  { %9 = vsyncpa [#allocation6], 0 }
   0x2   :  { %11 = vsyncpa [#allocation6 + $0x1], 0 }
   0x3   :  { %12 = vsyncpa [#allocation4], 0 }
   0x4   :  { %14 = vsyncpa [#allocation4 + $0x1], 0  ;;  %s845_s12 = smov 0   ;;  %s847_s13 = smov 0  }
   0x5   :  { %s849_s14 = smov 0   ;;  %s851_s15 = smov 0  }
   0x6   :  { %s853_s16 = smov 0   ;;  %s855_s17 = smov 0  }
   0x7 LB: > { %s32_s18 = sadd.s32 1, %s814_s16  ;;  %s65_s19 = sadd.s32 1, %s806_s14  ;;  %s818_s17 = sphi %s855_s17, %s20_s17   ;;  %s814_s16 = sphi %s853_s16, %s1035_s16   ;;  %s810_s15 = sphi %s851_s15, %s1034_s15   ;;  %s806_s14 = sphi %s849_s14, %s1033_s14   ;;  %s802_s13 = sphi %s847_s13, %s1032_s13   ;;  %s798_s12 = sphi %s845_s12, %s1031_s12  }
   0x8   : > { %p34_p0 = scmp.ge.s32.totalorder %s32_s18, 3  ;;  %p72_p1 = scmp.ne.s32.totalorder %s806_s14, %s802_s13 }
   0x9   : > { %p73_p2 = scmp.eq.s32.totalorder %s818_s17, 0  ;;  %p585_p5 = scmp.lt.s32.totalorder %s818_s17, 3 }
   0xa   : > { %s1037_s18 = smov (%p34_p0, %s32_s18), 0  ;;  %s173_s22 = sand.u32 1, %s818_s17  }
   0xb   : > { %p885_p3 = por %p73_p2, %p72_p1  ;;  %s62_s21 = ssub.s32 %s814_s16, %s1037_s18 }
   0xc   : > { %p63_p4 = scmp.eq.s32.totalorder %s62_s21, 0  ;;  %s175_s23 = sand.u32 1, %s806_s14  }
   0xd   : > { %s495_s25 = sshll.u32 %s175_s23, 6  ;;  %s543_s26 = sshll.u32 %s814_s16, 6 }
   0xe   : > { %s895_s24 = scalar_select %p63_p4, %s806_s14, %s65_s19  }
   0xf   : > { %s182_s29 = scalar_lea.hbm %s1022_s1, %s543_s26  ;;  %s177_s30 = scalar_lea.vmem [#allocation5], %s495_s25 }
  0x10   : > { %s185_s4 = sshll.u32 %s177_s30, 4  ;;  %s183_s5 = sshll.u32 %s182_s29, 4  ;;  %s186_s4 = int_to_ptr.vmem [resolvable:$true] %s185_s4  ;;  %s184_s5 = int_to_ptr.hbm [resolvable:$true] %s183_s5 }
  0x11   : > { %p905_p6 = pnand %p585_p5, %p885_p3  ;;  %s909_s7 = scalar_lea.sflag [#allocation6], %s173_s22 }
  0x12   : > { %s820_s8 = smov 64   ;;  %s821_s9 = smov 4  }
  0x13   : > { %576 = dma.hbm_to_vmem [thread:$0]  (!%p905_p6), %s184_s5, 1024, %s186_s4, %s909_s7, %s820_s8, %s820_s8, %s821_s9  }
  0x14   : > { %s918_s10 = sadd.s32 4294967295, %s818_s17   ;;  %s491_s11 = sadd.s32 4294967294, %s818_s17  }
  0x15   : > { %p78_p7 = scmp.ne.s32.totalorder %s802_s13, %s798_s12  ;;  %p79_p8 = scmp.eq.s32.totalorder %s918_s10, 0 }
  0x16   : > { %p130_p9 = scmp.eq.s32.totalorder %s918_s10, 2  ;;  %p136_p10 = scmp.eq.s32.totalorder %s491_s11, 2 }
  0x17   : > { %p492_p11 = scmp.ge.s32.totalorder %s818_s17, 1  ;;  %p928_p12 = por %p79_p8, %p78_p7 }
  0x18   : > { %p935_p13 = por %p130_p9, %p72_p1  ;;  %p939_p0 = por %p136_p10, %p78_p7 }
  0x19   : > { %p143_p2 = scmp.lt.s32.totalorder %s818_s17, 4  ;;  %s157_s26 = sshll.u32 %s1021_s0, 4  ;;  %s158_s26 = int_to_ptr.hbm [resolvable:$true] %s157_s26 }
  0x1a   : > { %s822_s28 = smov [#allocation2]   ;;  %s201_s5 = scalar_lea.hbm %s1023_s2, %s814_s16 }
  0x1b   : > { %p947_p3 = pnand %p492_p11, %p143_p2  ;;  %s159_s29 = sshll.u32 %s822_s28, 4  ;;  %s160_s29 = int_to_ptr.vmem [resolvable:$true] %s159_s29 }
  0x1c   : > { %s203_s11 = sshll.u32 %s201_s5, 4  ;;  %s198_s22 = scalar_lea.vmem [#allocation7], %s175_s23  ;;  %s204_s11 = int_to_ptr.hbm [resolvable:$true] %s203_s11 }
  0x1d   : > { %p569_p1 = pneg %p947_p3  ;;  %s205_s25 = sshll.u32 %s198_s22, 4  ;;  %s206_s25 = int_to_ptr.vmem [resolvable:$true] %s205_s25 }
  0x1e   : > { %579 = dma.hbm_to_vmem [thread:$0]  (!%p905_p6), %s204_s11, 16, %s206_s25, %s909_s7  }
  0x1f   : > { %p570_p4 = pnand %p569_p1, %p79_p8  ;;  %214 = sbr.rel (%p947_p3) target bundleno = 215 (0xd7), region = 32 }
  0x21   : > { %572 = dma.hbm_to_vmem [thread:$0]  (!%p570_p4), %s158_s26, 128, %s160_s29, [#allocation3], %s820_s8, %s820_s8, %s821_s9  }
  0x24   : > { %785 = dma.done.wait (%p79_p8), [#allocation3], 128  }
  0x25   : > { %787 = vsyncadd (%p79_p8), [#allocation3], 4294967168  ;;  %s221_s23 = sand.u32 1, %s918_s10   ;;  %s975_s28 = sand.u32 1, %s802_s13  }
  0x26   : > { %s500_s30 = sshll.u32 %s975_s28, 6  ;;  %s222_s8 = scalar_lea.sflag [#allocation6], %s221_s23 }
  0x27   : > { %s225_s6 = scalar_lea.vmem [#allocation5], %s500_s30 }
  0x28   : > { %789 = dma.done.wait (%p928_p12), %s222_s8, 1040  }
  0x29   : > { %791 = vsyncadd (%p928_p12), %s222_s8, 4294966256  ;;  %v552_v0 = vld [vmem:[%s225_s6 + $0x38] sm:$0xff]  ;;  %v551_v1 = vld [vmem:[%s225_s6 + $0x30] sm:$0xff]  ;;  %s234_s7 = scalar_lea.vmem [#allocation7], %s975_s28  ;;  %s501_s9 = sshll.u32 %s975_s28, 3 }
  0x2a   : > { %340 = vmatpush.bf16.msra.mxu0 %v552_v0  ;;  %v550_v2 = vld [vmem:[%s225_s6 + $0x28] sm:$0xff]  ;;  %v549_v3 = vld [vmem:[%s225_s6 + $0x20] sm:$0xff]  ;;  %v548_v4 = vld [vmem:[%s225_s6 + $0x18] sm:$0xff]  ;;  %s553_s10 = sshll.u32 %s810_s15, 3  ;;  %s261_s29 = scalar_lea.vmem [#allocation8], %s501_s9 }
  0x2b   : > { %v547_v5 = vld [vmem:[%s225_s6 + $0x10] sm:$0xff]  ;;  %v546_v6 = vld [vmem:[%s225_s6 + $0x8] sm:$0xff]  ;;  %v545_v7 = vld [vmem:[%s225_s6] sm:$0xff]  ;;  %s372_s27 = scalar_lea.hbm %s1024_s3, %s553_s10  ;;  %s373_s4 = sshll.u32 %s261_s29, 4  ;;  %s374_s4 = int_to_ptr.vmem [resolvable:$true] %s373_s4 }
  0x2c   : > { %v544_v8 = vld [vmem:[#allocation2] sm:$0xff]  ;;  %s375_s5 = sshll.u32 %s372_s27, 4  ;;  %s359_s11 = scalar_lea.sflag [#allocation4], %s975_s28  ;;  %s376_s5 = int_to_ptr.hbm [resolvable:$true] %s375_s5 }
  0x2d   : > { %v641_v10 = vld [vmem:[%s234_s7] ss:$0 sm:$0xff]  ;;  %s746_s22 = sshra.s32 %s376_s5, 4  ;;  %s752_s30 = scalar_lea.hbm %s1024_s3, 24  ;;  %s747_s22 = int_to_ptr.hbm [resolvable:$true] %s746_s22 }
  0x2e   : > { %341 = vmatpush.bf16.msra.mxu0 %v551_v1  ;;  %s748_s15 = scalar_lea.hbm %s747_s22, 8  ;;  %p753_p8 = scmp.lt.s32.totalorder %s747_s22, %s1024_s3 }
  0x2f   : > { %p749_p5 = scmp.ne.s32.totalorder %s747_s22, %s748_s15  ;;  %p754_p9 = scmp.lt.s32.totalorder %s752_s30, %s748_s15 }
  0x31   : > { %p750_p6 = pnand %p749_p5, %p935_p13  ;;  %p755_p10 = por %p754_p9, %p753_p8 }
  0x32   : > { %342 = vmatpush.bf16.msra.mxu0 %v550_v2 }
  0x33   : > { %p751_p7 = pneg %p750_p6 }
  0x35   : > { %p756_p11 = pnand %p755_p10, %p751_p7 }
  0x36   : > { %343 = vmatpush.bf16.msra.mxu0 %v549_v3 }
  0x3a   : > { %344 = vmatpush.bf16.msra.mxu0 %v548_v4 }
  0x3e   : > { %345 = vmatpush.bf16.msra.mxu0 %v547_v5 }
  0x42   : > { %346 = vmatpush.bf16.msra.mxu0 %v546_v6 }
  0x46   : > { %347 = vmatpush.bf16.msra.mxu0 %v545_v7 }
  0x49   : > { %348 = vmatmul.bf16.vlgmr.msra.gmra.mxu0 %v544_v8 }
  0xc6   : > { %v349_v9 = vpop.f32.mrf.mxu0 }
  0xc7   : > { %v350_v12 = vadd.f32 %v641_v10, %v349_v9 }
  0xce   : > { %v351_v11 = vpop.f32.mrf.mxu0 }
  0xcf   : > { %v352_v13 = vadd.f32 %v641_v10, %v351_v11 }
  0xd1   : > { %v557_v14 = vpack.c.bf16 %v352_v13, %v350_v12 }
  0xd3   : > { %558 = vst [vmem:[%s261_s29] sm:$0xff] %v557_v14  }
  0xd4   : > { %759 = shalt.err (!%p756_p11)
}
  0xd5   : > { %s823_s28 = smov 64   ;;  %s824_s7 = smov 4  }
  0xd6   : > { %567 = dma.vmem_to_hbm [thread:$0]  (%p935_p13), %s374_s4, 128, %s376_s5, %s359_s11, %s823_s28, %s823_s28, %s824_s7  }
  0xd7 PF: > { %p587_p12 = scmp.ge.s32.totalorder %s818_s17, 2  ;;  %s390_s9 = sand.u32 1, %s798_s12  }
  0xd8   : > { %s391_s10 = scalar_lea.sflag [#allocation4], %s390_s9 }
  0xd9   : > { %p581_p2 = pnand %p587_p12, %p939_p0 }
  0xdb   : > { %p582_p3 = pneg %p581_p2 }
  0xdd   : > { %793 = dma.done.wait (%p582_p3), %s391_s10, 128  }
  0xde   : > { %795 = vsyncadd (%p582_p3), %s391_s10, 4294967168  ;;  %s20_s17 = sadd.s32 1, %s818_s17   ;;  %s1031_s12 = smov %s802_s13 }
  0xdf   : > { %p17_p1 = scmp.ge.s32.totalorder %s20_s17, 5   ;;  %s1032_s13 = smov %s806_s14 }
  0xe0   : > { %s1033_s14 = smov %s895_s24  ;;  %s1034_s15 = smov %s814_s16 }
  0xe1   : > { %s1035_s16 = smov %s1037_s18  ;;  %19 = sbr.rel (!%p17_p1) target bundleno = 7 (0x7), region = 94 }
  0xe6   :  { %397 = vsyncpa [#allocation3], 1 }
  0xe7   :  { %399 = vsyncpa [#allocation3 + $0x1], 1 }
  0xe8   :  { %400 = vsyncpa [#allocation6], 1 }
  0xe9   :  { %402 = vsyncpa [#allocation6 + $0x1], 1 }
  0xea   :  { %403 = vsyncpa [#allocation4], 1 }
  0xeb   :  { %405 = vsyncpa [#allocation4 + $0x1], 1 }

</bundles_post_ra>
